<compile_context>
chip_gen: v5e
topology: v5e:2x2
jax: 0.10.0
libtpu: 0.0.40
codegen_flags: <defaults>
</compile_context>

<pallas_src>
import jax
import jax.numpy as jnp
from jax.experimental import pallas as pl
from jax.experimental.pallas import tpu as pltpu

SELU_ALPHA = 1.6732632423543772
SELU_SCALE = 1.0507009873554805


def _selu(x):
    # exp only on the non-positive branch (avoids inf in the untaken branch).
    return SELU_SCALE * jnp.where(
        x > 0, x, SELU_ALPHA * (jnp.exp(jnp.minimum(x, 0.0)) - 1.0))


def decoder_kernel(l1_ref, l2_ref, l3_ref, l4_ref,
                   w1_ref, b1_ref, w2_ref, b2_ref,
                   w3_ref, b3_ref, w4_ref, b4_ref,
                   out_ref, cat_ref):
    """Activations are (C, tile_hw): channels on sublanes, spatial on lanes.

    cat_ref is a reused (8*h, tile_hw) bf16 scratch slab that stages each
    fused [dec_prev ; lstm_k] channel-concat, so every decoder layer is a
    single bf16 MXU matmul with f32 accumulation.
    """
    c1 = l1_ref.shape[0]      # h
    c2 = l2_ref.shape[0]      # 2h
    c4 = l3_ref.shape[0]      # 4h
    cat_dtype = cat_ref.dtype

    # dec4 = SELU(W1^T @ lstm4 + b1)                         (8h -> 4h)
    dec4 = _selu(jnp.dot(w1_ref[...], l4_ref[...],
                         preferred_element_type=jnp.float32) + b1_ref[...])

    # dec3 = SELU(W2^T @ cat([dec4, lstm3], C) + b2)         (8h -> 2h)
    cat_ref[:c4, :] = dec4.astype(cat_dtype)
    cat_ref[c4:2 * c4, :] = l3_ref[...].astype(cat_dtype)
    dec3 = _selu(jnp.dot(w2_ref[...], cat_ref[...],
                         preferred_element_type=jnp.float32) + b2_ref[...])

    # dec2 = SELU(W3^T @ cat([dec3, lstm2], C) + b3)         (4h -> h)
    cat_ref[:c2, :] = dec3.astype(cat_dtype)
    cat_ref[c2:2 * c2, :] = l2_ref[...].astype(cat_dtype)
    dec2 = _selu(jnp.dot(w3_ref[...], cat_ref[:2 * c2, :],
                         preferred_element_type=jnp.float32) + b3_ref[...])

    # dec1 = SELU(W4^T @ cat([dec2, lstm1], C) + b4)         (2h -> x_dim)
    cat_ref[:c1, :] = dec2.astype(cat_dtype)
    cat_ref[c1:2 * c1, :] = l1_ref[...].astype(cat_dtype)
    dec1 = _selu(jnp.dot(w4_ref[...], cat_ref[:2 * c1, :],
                         preferred_element_type=jnp.float32) + b4_ref[...])

    out_ref[...] = dec1.astype(out_ref.dtype)


def init_params(key, x_dim, h_dim, dtype=jnp.float32):
    """ConvTranspose2d(kernel_size=1) weights stored as (Cin, Cout) matrices."""
    dims = [
        (h_dim * 8, h_dim * 4),  # first_layer_decoder
        (h_dim * 8, h_dim * 2),  # second_layer_decoder
        (h_dim * 4, h_dim),      # third_layer_decoder
        (h_dim * 2, x_dim),      # fourth_layer_decoder
    ]
    params = {}
    keys = jax.random.split(key, 2 * len(dims))
    for i, (cin, cout) in enumerate(dims):
        bound = 1.0 / jnp.sqrt(cin)
        params[f"w{i+1}"] = jax.random.uniform(
            keys[2 * i], (cin, cout), dtype, minval=-bound, maxval=bound)
        params[f"b{i+1}"] = jax.random.uniform(
            keys[2 * i + 1], (cout,), dtype, minval=-bound, maxval=bound)
    return params


def _vmem_budget_bytes():
    """Generation-aware VMEM budget: ~3/4 of physical per-core VMEM.

    v5e/v6e (128 MiB) -> 96 MiB, v7x (64 MiB) -> 48 MiB.  Falls back to the
    v7x-safe 48 MiB if the hardware query is unavailable.
    """
    cap = 64 * 1024 * 1024
    try:
        cap = int(pltpu.get_tpu_info().vmem_capacity_bytes)
    except Exception:
        pass
    return max(32 * 1024 * 1024, min(96 * 1024 * 1024, (cap * 3) // 4))


def _bytes_per_pixel(h, x_dim, act_bytes, out_bytes):
    """Approximate VMEM bytes held per spatial pixel at steady state."""
    io = 2 * act_bytes * 15 * h + 2 * out_bytes * x_dim   # double-buffered I/O
    scratch = act_bytes * 8 * h                           # concat staging slab
    live = 4 * (7 * h + x_dim)                            # f32 intermediates
    return io + scratch + live


def _pick_tile_hw(hw, cap, min_blocks=1):
    """Largest multiple-of-128 divisor of hw that is <= cap and yields at
    least `min_blocks` grid steps; falls back to the (always legal) full
    extent, and fails loudly rather than emitting a block past the VMEM cap."""
    limit = min(cap, hw // min_blocks) if min_blocks > 1 else min(cap, hw)
    t = (limit // 128) * 128
    while t >= 128:
        if hw % t == 0:
            return t
        t -= 128
    if hw <= cap:
        return hw      # full-extent single block -- always a legal BlockSpec
    raise ValueError(
        f"H*W={hw} has no multiple-of-128 divisor <= {cap}; pad the spatial "
        "extent or pass tile_hw explicitly.")


def cnn_decoder_layers(lstm1, lstm2, lstm3, lstm4, params, *,
                       tile_hw=None, act_dtype=jnp.bfloat16):
    B, h, H, W = lstm1.shape
    x_dim = params["w4"].shape[1]
    HW = H * W
    out_dtype = lstm1.dtype          # tiny x_dim-channel output stays full precision

    act_bytes = jnp.dtype(act_dtype).itemsize
    out_bytes = jnp.dtype(out_dtype).itemsize
    budget = _vmem_budget_bytes()
    if tile_hw is None:
        per_px = _bytes_per_pixel(h, x_dim, act_bytes, out_bytes)
        cap = max(128, min(32768, ((budget // 2) // per_px // 128) * 128))
        min_blocks = 2 if B < 2 else 1   # keep both v7x TensorCores busy
        tile_hw = _pick_tile_hw(HW, cap, min_blocks)
    assert HW % tile_hw == 0, "H*W must be a multiple of tile_hw"

    # NCHW consumed directly: collapsing H,W is a free reshape (no transpose).
    # HBM activations drop to bf16 (bandwidth lever); math stays f32 in-kernel.
    a1 = lstm1.reshape(B, h, HW).astype(act_dtype)
    a2 = lstm2.reshape(B, 2 * h, HW).astype(act_dtype)
    a3 = lstm3.reshape(B, 4 * h, HW).astype(act_dtype)
    a4 = lstm4.reshape(B, 8 * h, HW).astype(act_dtype)

    # Transposed (Cout, Cin) weights so every 1x1 ConvT is y = W^T @ x.  The
    # concat weights stay UN-split (the concat is staged in VMEM instead),
    # so each layer is one bf16 MXU matmul.  Biases stay f32 (they are tiny).
    w1t = params["w1"].T.astype(act_dtype)      # (4h, 8h)
    w2t = params["w2"].T.astype(act_dtype)      # (2h, 8h)
    w3t = params["w3"].T.astype(act_dtype)      # (h, 4h)
    w4t = params["w4"].T.astype(act_dtype)      # (x_dim, 2h)
    b1 = params["b1"][:, None].astype(jnp.float32)
    b2 = params["b2"][:, None].astype(jnp.float32)
    b3 = params["b3"][:, None].astype(jnp.float32)
    b4 = params["b4"][:, None].astype(jnp.float32)

    grid = (B, HW // tile_hw)

    def act_spec(c):
        # (None, C, tile_hw): batch squeezed, channels on sublanes, spatial on
        # the 128-wide lane axis (lane-dense loads/stores).
        return pl.BlockSpec((None, c, tile_hw), lambda b, j: (b, 0, j))

    def resident(a):
        # Grid-invariant (VMEM-resident) weight / bias block.
        return pl.BlockSpec(a.shape, lambda b, j: (0,) * a.ndim)

    out = pl.pallas_call(
        decoder_kernel,
        out_shape=jax.ShapeDtypeStruct((B, x_dim, HW), out_dtype),
        grid=grid,
        in_specs=[
            act_spec(h), act_spec(2 * h), act_spec(4 * h), act_spec(8 * h),
            resident(w1t), resident(b1), resident(w2t), resident(b2),
            resident(w3t), resident(b3), resident(w4t), resident(b4),
        ],
        out_specs=pl.BlockSpec((None, x_dim, tile_hw), lambda b, j: (b, 0, j)),
        scratch_shapes=[pltpu.VMEM((8 * h, tile_hw), act_dtype)],
        compiler_params=pltpu.CompilerParams(
            dimension_semantics=("parallel", "parallel"),
            vmem_limit_bytes=budget),
    )(a1, a2, a3, a4, w1t, b1, w2t, b2, w3t, b3, w4t, b4)

    return out.reshape(B, x_dim, H, W)


def reference(lstm1, lstm2, lstm3, lstm4, params):
    """Plain-JAX replica of the PyTorch forward (NCHW, torch.cat on dim=1)."""
    def convt1x1_selu(x, w, b):
        y = jnp.einsum("bchw,cd->bdhw", x, w, precision="highest")
        return _selu(y + b[None, :, None, None])

    dec4 = convt1x1_selu(lstm4, params["w1"], params["b1"])
    dec4_cat = jnp.concatenate([dec4, lstm3], axis=1)
    dec3 = convt1x1_selu(dec4_cat, params["w2"], params["b2"])
    dec3_cat = jnp.concatenate([dec3, lstm2], axis=1)
    dec2 = convt1x1_selu(dec3_cat, params["w3"], params["b3"])
    dec2_cat = jnp.concatenate([dec2, lstm1], axis=1)
    dec1 = convt1x1_selu(dec2_cat, params["w4"], params["b4"])
    return dec1


if __name__ == "__main__":
    key = jax.random.PRNGKey(0)
    B, H, W = 2, 16, 16
    h_dim, x_dim = 8, 4

    k_p, k1, k2, k3, k4 = jax.random.split(key, 5)
    params = init_params(k_p, x_dim, h_dim)

    lstm1 = jax.random.normal(k1, (B, h_dim, H, W), jnp.float32)
    lstm2 = jax.random.normal(k2, (B, 2 * h_dim, H, W), jnp.float32)
    lstm3 = jax.random.normal(k3, (B, 4 * h_dim, H, W), jnp.float32)
    lstm4 = jax.random.normal(k4, (B, 8 * h_dim, H, W), jnp.float32)

    out = cnn_decoder_layers(lstm1, lstm2, lstm3, lstm4, params)
    out = jax.block_until_ready(out)
    assert out.shape == (B, x_dim, H, W), out.shape

    # Reference in f32 ("highest" precision) on the same bf16-quantised
    # inputs/weights the kernel sees; the only remaining difference is the
    # bf16 rounding of the in-kernel intermediates, well under the tolerance.
    q = lambda a: a.astype(jnp.bfloat16).astype(jnp.float32)
    params_q = dict(params)
    for i in range(1, 5):
        params_q[f"w{i}"] = q(params[f"w{i}"])
    ref = reference(q(lstm1), q(lstm2), q(lstm3), q(lstm4), params_q)

    err = float(jnp.max(jnp.abs(out.astype(jnp.float32) - ref)))
    assert err < 3e-2, err
    print("KERNEL_OK")
</pallas_src>

<mosaic_0001>
module attributes {stable_mosaic.version = 11 : i64} {
  func.func @decoder_kernel(%arg0: i32, %arg1: i32, %arg2: memref<1x8x256xbf16, #tpu.memory_space<vmem>>, %arg3: memref<1x16x256xbf16, #tpu.memory_space<vmem>>, %arg4: memref<1x32x256xbf16, #tpu.memory_space<vmem>>, %arg5: memref<1x64x256xbf16, #tpu.memory_space<vmem>>, %arg6: memref<32x64xbf16, #tpu.memory_space<vmem>>, %arg7: memref<32x1xf32, #tpu.memory_space<vmem>>, %arg8: memref<16x64xbf16, #tpu.memory_space<vmem>>, %arg9: memref<16x1xf32, #tpu.memory_space<vmem>>, %arg10: memref<8x32xbf16, #tpu.memory_space<vmem>>, %arg11: memref<8x1xf32, #tpu.memory_space<vmem>>, %arg12: memref<4x16xbf16, #tpu.memory_space<vmem>>, %arg13: memref<4x1xf32, #tpu.memory_space<vmem>>, %arg14: memref<1x4x256xf32, #tpu.memory_space<vmem>>, %arg15: memref<64x256xbf16, #tpu.memory_space<vmem>>) attributes {dimension_semantics = [#tpu.dimension_semantics<parallel>, #tpu.dimension_semantics<parallel>], iteration_bounds = array<i64: 2, 1>, scalar_prefetch = 0 : i64, scratch_operands = 1 : i64, tpu.core_type = #tpu.core_type<tc>, window_params = [{transform_indices = @transform_0, window_bounds = array<i64: 1, 8, 256>}, {transform_indices = @transform_1, window_bounds = array<i64: 1, 16, 256>}, {transform_indices = @transform_2, window_bounds = array<i64: 1, 32, 256>}, {transform_indices = @transform_3, window_bounds = array<i64: 1, 64, 256>}, {pipeline_mode = #tpu.pipeline_mode<synchronous>, transform_indices = @transform_4, window_bounds = array<i64: 32, 64>}, {pipeline_mode = #tpu.pipeline_mode<synchronous>, transform_indices = @transform_5, window_bounds = array<i64: 32, 1>}, {pipeline_mode = #tpu.pipeline_mode<synchronous>, transform_indices = @transform_6, window_bounds = array<i64: 16, 64>}, {pipeline_mode = #tpu.pipeline_mode<synchronous>, transform_indices = @transform_7, window_bounds = array<i64: 16, 1>}, {pipeline_mode = #tpu.pipeline_mode<synchronous>, transform_indices = @transform_8, window_bounds = array<i64: 8, 32>}, {pipeline_mode = #tpu.pipeline_mode<synchronous>, transform_indices = @transform_9, window_bounds = array<i64: 8, 1>}, {pipeline_mode = #tpu.pipeline_mode<synchronous>, transform_indices = @transform_10, window_bounds = array<i64: 4, 16>}, {pipeline_mode = #tpu.pipeline_mode<synchronous>, transform_indices = @transform_11, window_bounds = array<i64: 4, 1>}, {transform_indices = @transform_12, window_bounds = array<i64: 1, 4, 256>}]} {
    %c0 = arith.constant 0 : index
    %c0_0 = arith.constant 0 : index
    %0 = vector.load %arg6[%c0, %c0_0] : memref<32x64xbf16, #tpu.memory_space<vmem>>, vector<32x64xbf16>
    %c0_1 = arith.constant 0 : index
    %c0_2 = arith.constant 0 : index
    %c0_3 = arith.constant 0 : index
    %1 = vector.load %arg5[%c0_1, %c0_2, %c0_3] : memref<1x64x256xbf16, #tpu.memory_space<vmem>>, vector<1x64x256xbf16>
    %2 = vector.shape_cast %1 : vector<1x64x256xbf16> to vector<64x256xbf16>
    %cst = arith.constant dense<0.000000e+00> : vector<32x256xf32>
    %3 = tpu.matmul %0, %2, %cst {dimension_numbers = #tpu.dot_dimension_numbers<[1], [0], [0], [1], [0, 0, 1, 1], [], []>} : vector<32x64xbf16>, vector<64x256xbf16>, vector<32x256xf32> -> vector<32x256xf32>
    %c0_4 = arith.constant 0 : index
    %c0_5 = arith.constant 0 : index
    %4 = vector.load %arg7[%c0_4, %c0_5] : memref<32x1xf32, #tpu.memory_space<vmem>>, vector<32x1xf32>
    %5 = vector.broadcast %4 : vector<32x1xf32> to vector<32x256xf32>
    %6 = arith.addf %3, %5 : vector<32x256xf32>
    %cst_6 = arith.constant 0.000000e+00 : f32
    %7 = vector.broadcast %cst_6 : f32 to vector<32x256xf32>
    %8 = arith.cmpf ogt, %6, %7 : vector<32x256xf32>
    %cst_7 = arith.constant 0.000000e+00 : f32
    %9 = vector.broadcast %cst_7 : f32 to vector<32x256xf32>
    %10 = arith.minimumf %6, %9 : vector<32x256xf32>
    %11 = math.exp %10 : vector<32x256xf32>
    %cst_8 = arith.constant 1.000000e+00 : f32
    %12 = vector.broadcast %cst_8 : f32 to vector<32x256xf32>
    %13 = arith.subf %11, %12 : vector<32x256xf32>
    %cst_9 = arith.constant 1.67326319 : f32
    %14 = vector.broadcast %cst_9 : f32 to vector<32x256xf32>
    %15 = arith.mulf %14, %13 : vector<32x256xf32>
    %16 = arith.select %8, %6, %15 : vector<32x256xi1>, vector<32x256xf32>
    %cst_10 = arith.constant 1.05070102 : f32
    %17 = vector.broadcast %cst_10 : f32 to vector<32x256xf32>
    %18 = arith.mulf %17, %16 : vector<32x256xf32>
    %19 = arith.truncf %18 : vector<32x256xf32> to vector<32x256xbf16>
    %c0_11 = arith.constant 0 : index
    %c0_12 = arith.constant 0 : index
    %20 = vector.load %arg15[%c0_11, %c0_12] : memref<64x256xbf16, #tpu.memory_space<vmem>>, vector<32x256xbf16>
    tpu.vector_store %arg15[%c0_11, %c0_12], %19 {strides = array<i32>} : memref<64x256xbf16, #tpu.memory_space<vmem>>, vector<32x256xbf16>,
    %c0_13 = arith.constant 0 : index
    %c0_14 = arith.constant 0 : index
    %c0_15 = arith.constant 0 : index
    %21 = vector.load %arg4[%c0_13, %c0_14, %c0_15] : memref<1x32x256xbf16, #tpu.memory_space<vmem>>, vector<1x32x256xbf16>
    %22 = vector.shape_cast %21 : vector<1x32x256xbf16> to vector<32x256xbf16>
    %c32 = arith.constant 32 : index
    %c0_16 = arith.constant 0 : index
    %23 = vector.load %arg15[%c32, %c0_16] : memref<64x256xbf16, #tpu.memory_space<vmem>>, vector<32x256xbf16>
    tpu.vector_store %arg15[%c32, %c0_16], %22 {strides = array<i32>} : memref<64x256xbf16, #tpu.memory_space<vmem>>, vector<32x256xbf16>,
    %c0_17 = arith.constant 0 : index
    %c0_18 = arith.constant 0 : index
    %24 = vector.load %arg8[%c0_17, %c0_18] : memref<16x64xbf16, #tpu.memory_space<vmem>>, vector<16x64xbf16>
    %c0_19 = arith.constant 0 : index
    %c0_20 = arith.constant 0 : index
    %25 = vector.load %arg15[%c0_19, %c0_20] : memref<64x256xbf16, #tpu.memory_space<vmem>>, vector<64x256xbf16>
    %cst_21 = arith.constant dense<0.000000e+00> : vector<16x256xf32>
    %26 = tpu.matmul %24, %25, %cst_21 {dimension_numbers = #tpu.dot_dimension_numbers<[1], [0], [0], [1], [0, 0, 1, 1], [], []>} : vector<16x64xbf16>, vector<64x256xbf16>, vector<16x256xf32> -> vector<16x256xf32>
    %c0_22 = arith.constant 0 : index
    %c0_23 = arith.constant 0 : index
    %27 = vector.load %arg9[%c0_22, %c0_23] : memref<16x1xf32, #tpu.memory_space<vmem>>, vector<16x1xf32>
    %28 = vector.broadcast %27 : vector<16x1xf32> to vector<16x256xf32>
    %29 = arith.addf %26, %28 : vector<16x256xf32>
    %cst_24 = arith.constant 0.000000e+00 : f32
    %30 = vector.broadcast %cst_24 : f32 to vector<16x256xf32>
    %31 = arith.cmpf ogt, %29, %30 : vector<16x256xf32>
    %cst_25 = arith.constant 0.000000e+00 : f32
    %32 = vector.broadcast %cst_25 : f32 to vector<16x256xf32>
    %33 = arith.minimumf %29, %32 : vector<16x256xf32>
    %34 = math.exp %33 : vector<16x256xf32>
    %cst_26 = arith.constant 1.000000e+00 : f32
    %35 = vector.broadcast %cst_26 : f32 to vector<16x256xf32>
    %36 = arith.subf %34, %35 : vector<16x256xf32>
    %cst_27 = arith.constant 1.67326319 : f32
    %37 = vector.broadcast %cst_27 : f32 to vector<16x256xf32>
    %38 = arith.mulf %37, %36 : vector<16x256xf32>
    %39 = arith.select %31, %29, %38 : vector<16x256xi1>, vector<16x256xf32>
    %cst_28 = arith.constant 1.05070102 : f32
    %40 = vector.broadcast %cst_28 : f32 to vector<16x256xf32>
    %41 = arith.mulf %40, %39 : vector<16x256xf32>
    %42 = arith.truncf %41 : vector<16x256xf32> to vector<16x256xbf16>
    %c0_29 = arith.constant 0 : index
    %c0_30 = arith.constant 0 : index
    %43 = vector.load %arg15[%c0_29, %c0_30] : memref<64x256xbf16, #tpu.memory_space<vmem>>, vector<16x256xbf16>
    tpu.vector_store %arg15[%c0_29, %c0_30], %42 {strides = array<i32>} : memref<64x256xbf16, #tpu.memory_space<vmem>>, vector<16x256xbf16>,
    %c0_31 = arith.constant 0 : index
    %c0_32 = arith.constant 0 : index
    %c0_33 = arith.constant 0 : index
    %44 = vector.load %arg3[%c0_31, %c0_32, %c0_33] : memref<1x16x256xbf16, #tpu.memory_space<vmem>>, vector<1x16x256xbf16>
    %45 = vector.shape_cast %44 : vector<1x16x256xbf16> to vector<16x256xbf16>
    %c16 = arith.constant 16 : index
    %c0_34 = arith.constant 0 : index
    %46 = vector.load %arg15[%c16, %c0_34] : memref<64x256xbf16, #tpu.memory_space<vmem>>, vector<16x256xbf16>
    tpu.vector_store %arg15[%c16, %c0_34], %45 {strides = array<i32>} : memref<64x256xbf16, #tpu.memory_space<vmem>>, vector<16x256xbf16>,
    %c0_35 = arith.constant 0 : index
    %c0_36 = arith.constant 0 : index
    %47 = vector.load %arg10[%c0_35, %c0_36] : memref<8x32xbf16, #tpu.memory_space<vmem>>, vector<8x32xbf16>
    %c0_37 = arith.constant 0 : index
    %c0_38 = arith.constant 0 : index
    %48 = vector.load %arg15[%c0_37, %c0_38] : memref<64x256xbf16, #tpu.memory_space<vmem>>, vector<32x256xbf16>
    %cst_39 = arith.constant dense<0.000000e+00> : vector<8x256xf32>
    %49 = tpu.matmul %47, %48, %cst_39 {dimension_numbers = #tpu.dot_dimension_numbers<[1], [0], [0], [1], [0, 0, 1, 1], [], []>} : vector<8x32xbf16>, vector<32x256xbf16>, vector<8x256xf32> -> vector<8x256xf32>
    %c0_40 = arith.constant 0 : index
    %c0_41 = arith.constant 0 : index
    %50 = vector.load %arg11[%c0_40, %c0_41] : memref<8x1xf32, #tpu.memory_space<vmem>>, vector<8x1xf32>
    %51 = vector.broadcast %50 : vector<8x1xf32> to vector<8x256xf32>
    %52 = arith.addf %49, %51 : vector<8x256xf32>
    %cst_42 = arith.constant 0.000000e+00 : f32
    %53 = vector.broadcast %cst_42 : f32 to vector<8x256xf32>
    %54 = arith.cmpf ogt, %52, %53 : vector<8x256xf32>
    %cst_43 = arith.constant 0.000000e+00 : f32
    %55 = vector.broadcast %cst_43 : f32 to vector<8x256xf32>
    %56 = arith.minimumf %52, %55 : vector<8x256xf32>
    %57 = math.exp %56 : vector<8x256xf32>
    %cst_44 = arith.constant 1.000000e+00 : f32
    %58 = vector.broadcast %cst_44 : f32 to vector<8x256xf32>
    %59 = arith.subf %57, %58 : vector<8x256xf32>
    %cst_45 = arith.constant 1.67326319 : f32
    %60 = vector.broadcast %cst_45 : f32 to vector<8x256xf32>
    %61 = arith.mulf %60, %59 : vector<8x256xf32>
    %62 = arith.select %54, %52, %61 : vector<8x256xi1>, vector<8x256xf32>
    %cst_46 = arith.constant 1.05070102 : f32
    %63 = vector.broadcast %cst_46 : f32 to vector<8x256xf32>
    %64 = arith.mulf %63, %62 : vector<8x256xf32>
    %65 = arith.truncf %64 : vector<8x256xf32> to vector<8x256xbf16>
    %c0_47 = arith.constant 0 : index
    %c0_48 = arith.constant 0 : index
    %66 = vector.load %arg15[%c0_47, %c0_48] : memref<64x256xbf16, #tpu.memory_space<vmem>>, vector<8x256xbf16>
    tpu.vector_store %arg15[%c0_47, %c0_48], %65 {strides = array<i32>} : memref<64x256xbf16, #tpu.memory_space<vmem>>, vector<8x256xbf16>,
    %c0_49 = arith.constant 0 : index
    %c0_50 = arith.constant 0 : index
    %c0_51 = arith.constant 0 : index
    %67 = vector.load %arg2[%c0_49, %c0_50, %c0_51] : memref<1x8x256xbf16, #tpu.memory_space<vmem>>, vector<1x8x256xbf16>
    %68 = vector.shape_cast %67 : vector<1x8x256xbf16> to vector<8x256xbf16>
    %c8 = arith.constant 8 : index
    %c0_52 = arith.constant 0 : index
    %69 = vector.load %arg15[%c8, %c0_52] : memref<64x256xbf16, #tpu.memory_space<vmem>>, vector<8x256xbf16>
    tpu.vector_store %arg15[%c8, %c0_52], %68 {strides = array<i32>} : memref<64x256xbf16, #tpu.memory_space<vmem>>, vector<8x256xbf16>,
    %c0_53 = arith.constant 0 : index
    %c0_54 = arith.constant 0 : index
    %70 = vector.load %arg12[%c0_53, %c0_54] : memref<4x16xbf16, #tpu.memory_space<vmem>>, vector<4x16xbf16>
    %c0_55 = arith.constant 0 : index
    %c0_56 = arith.constant 0 : index
    %71 = vector.load %arg15[%c0_55, %c0_56] : memref<64x256xbf16, #tpu.memory_space<vmem>>, vector<16x256xbf16>
    %cst_57 = arith.constant dense<0.000000e+00> : vector<4x256xf32>
    %72 = tpu.matmul %70, %71, %cst_57 {dimension_numbers = #tpu.dot_dimension_numbers<[1], [0], [0], [1], [0, 0, 1, 1], [], []>} : vector<4x16xbf16>, vector<16x256xbf16>, vector<4x256xf32> -> vector<4x256xf32>
    %c0_58 = arith.constant 0 : index
    %c0_59 = arith.constant 0 : index
    %73 = vector.load %arg13[%c0_58, %c0_59] : memref<4x1xf32, #tpu.memory_space<vmem>>, vector<4x1xf32>
    %74 = vector.broadcast %73 : vector<4x1xf32> to vector<4x256xf32>
    %75 = arith.addf %72, %74 : vector<4x256xf32>
    %cst_60 = arith.constant 0.000000e+00 : f32
    %76 = vector.broadcast %cst_60 : f32 to vector<4x256xf32>
    %77 = arith.cmpf ogt, %75, %76 : vector<4x256xf32>
    %cst_61 = arith.constant 0.000000e+00 : f32
    %78 = vector.broadcast %cst_61 : f32 to vector<4x256xf32>
    %79 = arith.minimumf %75, %78 : vector<4x256xf32>
    %80 = math.exp %79 : vector<4x256xf32>
    %cst_62 = arith.constant 1.000000e+00 : f32
    %81 = vector.broadcast %cst_62 : f32 to vector<4x256xf32>
    %82 = arith.subf %80, %81 : vector<4x256xf32>
    %cst_63 = arith.constant 1.67326319 : f32
    %83 = vector.broadcast %cst_63 : f32 to vector<4x256xf32>
    %84 = arith.mulf %83, %82 : vector<4x256xf32>
    %85 = arith.select %77, %75, %84 : vector<4x256xi1>, vector<4x256xf32>
    %cst_64 = arith.constant 1.05070102 : f32
    %86 = vector.broadcast %cst_64 : f32 to vector<4x256xf32>
    %87 = arith.mulf %86, %85 : vector<4x256xf32>
    %c0_65 = arith.constant 0 : index
    %c0_66 = arith.constant 0 : index
    %c0_67 = arith.constant 0 : index
    %88 = vector.load %arg14[%c0_65, %c0_66, %c0_67] : memref<1x4x256xf32, #tpu.memory_space<vmem>>, vector<1x4x256xf32>
    %89 = vector.shape_cast %88 : vector<1x4x256xf32> to vector<4x256xf32>
    %90 = vector.shape_cast %87 : vector<4x256xf32> to vector<1x4x256xf32>
    tpu.vector_store %arg14[%c0_65, %c0_66, %c0_67], %90 {strides = array<i32>} : memref<1x4x256xf32, #tpu.memory_space<vmem>>, vector<1x4x256xf32>,
    return
  }
  func.func @transform_0(%arg0: i32, %arg1: i32) -> (i32, i32, i32) {
    %c0_i32 = arith.constant 0 : i32
    %c0_i32_0 = arith.constant 0 : i32
    return %arg0, %c0_i32, %arg1 : i32, i32, i32
  }
  func.func @transform_1(%arg0: i32, %arg1: i32) -> (i32, i32, i32) {
    %c0_i32 = arith.constant 0 : i32
    %c0_i32_0 = arith.constant 0 : i32
    return %arg0, %c0_i32, %arg1 : i32, i32, i32
  }
  func.func @transform_2(%arg0: i32, %arg1: i32) -> (i32, i32, i32) {
    %c0_i32 = arith.constant 0 : i32
    %c0_i32_0 = arith.constant 0 : i32
    return %arg0, %c0_i32, %arg1 : i32, i32, i32
  }
  func.func @transform_3(%arg0: i32, %arg1: i32) -> (i32, i32, i32) {
    %c0_i32 = arith.constant 0 : i32
    %c0_i32_0 = arith.constant 0 : i32
    return %arg0, %c0_i32, %arg1 : i32, i32, i32
  }
  func.func @transform_4(%arg0: i32, %arg1: i32) -> (i32, i32) {
    %c0_i32 = arith.constant 0 : i32
    %c0_i32_0 = arith.constant 0 : i32
    %c0_i32_1 = arith.constant 0 : i32
    return %c0_i32, %c0_i32_0 : i32, i32
  }
  func.func @transform_5(%arg0: i32, %arg1: i32) -> (i32, i32) {
    %c0_i32 = arith.constant 0 : i32
    %c0_i32_0 = arith.constant 0 : i32
    %c0_i32_1 = arith.constant 0 : i32
    return %c0_i32, %c0_i32_0 : i32, i32
  }
  func.func @transform_6(%arg0: i32, %arg1: i32) -> (i32, i32) {
    %c0_i32 = arith.constant 0 : i32
    %c0_i32_0 = arith.constant 0 : i32
    %c0_i32_1 = arith.constant 0 : i32
    return %c0_i32, %c0_i32_0 : i32, i32
  }
  func.func @transform_7(%arg0: i32, %arg1: i32) -> (i32, i32) {
    %c0_i32 = arith.constant 0 : i32
    %c0_i32_0 = arith.constant 0 : i32
    %c0_i32_1 = arith.constant 0 : i32
    return %c0_i32, %c0_i32_0 : i32, i32
  }
  func.func @transform_8(%arg0: i32, %arg1: i32) -> (i32, i32) {
    %c0_i32 = arith.constant 0 : i32
    %c0_i32_0 = arith.constant 0 : i32
    %c0_i32_1 = arith.constant 0 : i32
    return %c0_i32, %c0_i32_0 : i32, i32
  }
  func.func @transform_9(%arg0: i32, %arg1: i32) -> (i32, i32) {
    %c0_i32 = arith.constant 0 : i32
    %c0_i32_0 = arith.constant 0 : i32
    %c0_i32_1 = arith.constant 0 : i32
    return %c0_i32, %c0_i32_0 : i32, i32
  }
  func.func @transform_10(%arg0: i32, %arg1: i32) -> (i32, i32) {
    %c0_i32 = arith.constant 0 : i32
    %c0_i32_0 = arith.constant 0 : i32
    %c0_i32_1 = arith.constant 0 : i32
    return %c0_i32, %c0_i32_0 : i32, i32
  }
  func.func @transform_11(%arg0: i32, %arg1: i32) -> (i32, i32) {
    %c0_i32 = arith.constant 0 : i32
    %c0_i32_0 = arith.constant 0 : i32
    %c0_i32_1 = arith.constant 0 : i32
    return %c0_i32, %c0_i32_0 : i32, i32
  }
  func.func @transform_12(%arg0: i32, %arg1: i32) -> (i32, i32, i32) {
    %c0_i32 = arith.constant 0 : i32
    %c0_i32_0 = arith.constant 0 : i32
    return %arg0, %c0_i32, %arg1 : i32, i32, i32
  }
}

</mosaic_0001>

<bundles_post_ra>
// kernel: tpu_custom_call.1
= control target key start
LH: loop header
LB: loop body
LE: loop exit
PB: predicated region body
PF: predicated region fallthrough
CT: control target
= control target key end

     0   :  { %s2073_s0 = inlined_call_operand.vmem [shape: bf16[2,8,256], index: 0, kind: input, shape index: {}]   ;;  %s2074_s1 = inlined_call_operand.vmem [shape: bf16[2,16,256], index: 1, kind: input, shape index: {}]   ;;  %s2075_s2 = inlined_call_operand.hbm [shape: bf16[2,32,256], index: 2, kind: input, shape index: {}]   ;;  %s2076_s3 = inlined_call_operand.hbm [shape: bf16[2,64,256], index: 3, kind: input, shape index: {}]   ;;  %s2077_s4 = inlined_call_operand.hbm [shape: bf16[32,64], index: 4, kind: input, shape index: {}]   ;;  %s2078_s5 = inlined_call_operand.vmem [shape: f32[32,1], index: 5, kind: input, shape index: {}]   ;;  %s2079_s6 = inlined_call_operand.vmem [shape: bf16[16,64], index: 6, kind: input, shape index: {}]   ;;  %s2080_s7 = inlined_call_operand.vmem [shape: f32[16,1], index: 7, kind: input, shape index: {}]   ;;  %s2081_s8 = inlined_call_operand.vmem [shape: bf16[8,32], index: 8, kind: input, shape index: {}]   ;;  %s2082_s9 = inlined_call_operand.vmem [shape: f32[8,1], index: 9, kind: input, shape index: {}]   ;;  %s2083_s10 = inlined_call_operand.vmem [shape: bf16[4,16], index: 10, kind: input, shape index: {}]   ;;  %s2084_s11 = inlined_call_operand.vmem [shape: f32[4,1], index: 11, kind: input, shape index: {}]   ;;  %s2085_s12 = inlined_call_operand.hbm [shape: f32[2,4,256], index: 12, kind: output, shape index: {}]  }
   0x1   :  { %2093 = sst [smem:[#allocation20_spill]] %s2073_s0 }
   0x2   :  { %2094 = sst [smem:[#allocation21_spill]] %s2075_s2 }
   0x3   :  { %2095 = sst [smem:[#allocation22_spill]] %s2077_s4 }
   0x4   :  { %2096 = sst [smem:[#allocation23_spill]] %s2081_s8 }
   0x5   :  { %2097 = sst [smem:[#allocation24_spill]] %s2083_s10 }
   0x6   :  { %2098 = sst [smem:[#allocation25_spill]] %s2085_s12 }
   0x7   :  { %17 = vsyncpa [#allocation4], 0 }
   0x8   :  { %19 = vsyncpa [#allocation4 + $0x1], 0 }
   0x9   :  { %20 = vsyncpa [#allocation7], 0 }
   0xa   :  { %22 = vsyncpa [#allocation7 + $0x1], 0 }
   0xb   :  { %23 = vsyncpa [#allocation5], 0 }
   0xc   :  { %25 = vsyncpa [#allocation5 + $0x1], 0  ;;  %s1818_s21 = smov 0   ;;  %s1820_s22 = smov 0  }
   0xd   :  { %s1822_s23 = smov 0   ;;  %s1824_s24 = smov 0  }
   0xe   :  { %s1826_s25 = smov 0   ;;  %s1828_s26 = smov 0  }
   0xf LB: > { %2099 = sst [smem:[#allocation14_spill]] %s1725_s21  ;;  %s1849_s27 = sadd.s32 4294967295, %s1745_s26   ;;  %s1745_s26 = sphi %s1828_s26, %s31_s26   ;;  %s1741_s25 = sphi %s1826_s25, %s2127_s25   ;;  %s1737_s24 = sphi %s1824_s24, %s2126_s24   ;;  %s1733_s23 = sphi %s1822_s23, %s2125_s23   ;;  %s1729_s22 = sphi %s1820_s22, %s2124_s22   ;;  %s1725_s21 = sphi %s1818_s21, %s2123_s21  }
  0x10   : > { %2100 = sst [smem:[#allocation15_spill]] %s1733_s23  ;;  %s1267_s28 = sadd.s32 4294967294, %s1745_s26  }
  0x11   : > { %p121_p0 = scmp.ne.s32.totalorder %s1729_s22, %s1725_s21  ;;  %p122_p1 = scmp.eq.s32.totalorder %s1849_s27, 0 }
  0x12   : > { %p343_p2 = scmp.eq.s32.totalorder %s1849_s27, 1  ;;  %p349_p3 = scmp.eq.s32.totalorder %s1267_s28, 1 }
  0x13   : > { %p1858_p4 = por %p122_p1, %p121_p0  ;;  %p1268_p5 = scmp.ge.s32.totalorder %s1745_s26, 1 }
  0x14   : > { %p1863_p6 = por %p349_p3, %p121_p0  ;;  %p356_p7 = scmp.lt.s32.totalorder %s1745_s26, 3 }
  0x15   : > { %s2104_s4 = sld [smem:[#allocation22_spill]]  ;;  %s1747_s17 = smov [#allocation8]  }
  0x16   : > { %s2102_s30 = scalar_select %p1863_p6, 1, 0 }
  0x17   : > { %p1871_p8 = pnand %p1268_p5, %p356_p7  ;;  %s369_s18 = sshll.u32 %s1747_s17, 4  ;;  %s370_s18 = int_to_ptr.vmem [resolvable:$true] %s369_s18 }
  0x18   : > { %2103 = sst [smem:[#allocation16_spill]] %s2102_s30  ;;  %p1270_p11 = scmp.ge.s32.totalorder %s1745_s26, 2 }
  0x19   : > { %p1457_p9 = pneg %p1871_p8  ;;  %s1748_s19 = smov 64  }
  0x1a   : > { %s1749_s20 = smov 4   ;;  %s43_s28 = sadd.s32 1, %s1741_s25 }
  0x1b   : > { %s367_s15 = sshll.u32 %s2104_s4, 4  ;;  %p1458_p10 = pnand %p1457_p9, %p122_p1  ;;  %s368_s15 = int_to_ptr.hbm [resolvable:$true] %s367_s15 }
  0x1c   : > { %p45_p12 = scmp.ge.s32.totalorder %s43_s28, 2  ;;  %s108_s13 = sadd.s32 1, %s1733_s23 }
  0x1d   : > { %1460 = dma.hbm_to_vmem [thread:$0]  (!%p1458_p10), %s368_s15, 256, %s370_s18, [#allocation7], %s1748_s19, %s1748_s19, %s1749_s20  }
  0x1e   : > { %p115_p13 = scmp.ne.s32.totalorder %s1733_s23, %s1729_s22  ;;  %p116_p0 = scmp.eq.s32.totalorder %s1745_s26, 0 }
  0x1f   : > { %s2129_s28 = smov (%p45_p12, %s43_s28), 0  ;;  %p1473_p7 = scmp.lt.s32.totalorder %s1745_s26, 2 }
  0x20   : > { %2106 = sst [smem:[#allocation17_spill]] %s2129_s28  ;;  %p1887_p3 = por %p116_p0, %p115_p13 }
  0x21   : > { %p1893_p5 = por %p343_p2, %p115_p13  ;;  %s103_s15 = ssub.s32 %s1741_s25, %s2129_s28 }
  0x22   : > { %p106_p9 = scmp.eq.s32.totalorder %s103_s15, 0  ;;  %s430_s18 = sand.u32 1, %s1733_s23  }
  0x23   : > { %s2108_s17 = scalar_select %p1893_p5, 1, 0 }
  0x24   : > { %s1271_s19 = sshll.u32 %s430_s18, 5  ;;  %s1417_s4 = sshll.u32 %s1741_s25, 5 }
  0x25   : > { %2109 = sst [smem:[#allocation18_spill]] %s2108_s17  ;;  %s434_s10 = scalar_lea.vmem [#allocation3], %s1271_s19 }
  0x26   : > { %s1902_s20 = scalar_select %p106_p9, %s1733_s23, %s108_s13  }
  0x27   : > { %s2111_s2 = sld [smem:[#allocation21_spill]]  ;;  %s444_s8 = sshll.u32 %s434_s10, 4  ;;  %s445_s8 = int_to_ptr.vmem [resolvable:$true] %s444_s8 }
  0x28   : > { %2110 = sst [smem:[#allocation19_spill]] %s1902_s20  ;;  %p1910_p2 = pnand %p1473_p7, %p1887_p3 }
  0x29   : > { %s454_s15 = sand.u32 1, %s1745_s26   ;;  %s431_s13 = scalar_lea.sflag [#allocation4], %s430_s18 }
  0x2a   : > { %s1750_s20 = smov 128   ;;  %s1751_s23 = smov 8  }
  0x2b   : > { %s1274_s21 = sshll.u32 %s430_s18, 6  ;;  %s455_s17 = scalar_lea.sflag [#allocation7], %s454_s15 }
  0x2c   : > { %s458_s19 = scalar_lea.vmem [#allocation6], %s1274_s21 }
  0x2d   : > { %s441_s12 = scalar_lea.hbm %s2111_s2, %s1417_s4  ;;  %s1418_s4 = sshll.u32 %s1741_s25, 6 }
  0x2e   : > { %s442_s0 = sshll.u32 %s441_s12, 4  ;;  %s465_s12 = scalar_lea.hbm %s2076_s3, %s1418_s4  ;;  %s443_s0 = int_to_ptr.hbm [resolvable:$true] %s442_s0 }
  0x2f   : > { %1464 = dma.hbm_to_vmem [thread:$0]  (!%p1910_p2), %s443_s0, 512, %s445_s8, %s431_s13, %s1750_s20, %s1750_s20, %s1751_s23  }
  0x30   : > { %s468_s14 = sshll.u32 %s458_s19, 4  ;;  %s466_s2 = sshll.u32 %s465_s12, 4  ;;  %s469_s14 = int_to_ptr.vmem [resolvable:$true] %s468_s14  ;;  %s467_s2 = int_to_ptr.hbm [resolvable:$true] %s466_s2 }
  0x31   : > { %1467 = dma.hbm_to_vmem [thread:$0]  (!%p1910_p2), %s467_s2, 1024, %s469_s14, %s455_s17, %s1750_s20, %s1750_s20, %s1751_s23  }
  0x32   : > { %480 = sbr.rel (%p1871_p8) target bundleno = 767 (0x2ff), region = 68  ;;  %s1926_s0 = sand.u32 (!%p1871_p8), 1, %s1729_s22  }
  0x33   : > { %s1278_s8 = sshll.u32 (!%p1871_p8), %s1926_s0, 5  ;;  %s483_s18 = scalar_lea.sflag (!%p1871_p8), [#allocation4], %s1926_s0 }
  0x34   : > { %s1930_s13 = scalar_lea.vmem (!%p1871_p8), [#allocation3], %s1278_s8 }
  0x37   : > { %1708 = dma.done.wait (%p1858_p4), %s483_s18, 512  }
  0x38   : > { %1710 = vsyncadd (%p1858_p4), %s483_s18, 4294966784  ;;  %s492_s2 = sand.u32 1, %s1849_s27   ;;  %s1279_s23 = sshll.u32 %s1926_s0, 6 }
  0x39   : > { %s493_s16 = scalar_lea.sflag [#allocation7], %s492_s2  ;;  %s1938_s28 = scalar_lea.vmem [#allocation6], %s1279_s23 }
  0x3a   : > { %1712 = dma.done.wait (%p1858_p4), %s493_s16, 1024  }
  0x3b   : > { %1714 = vsyncadd (%p1858_p4), %s493_s16, 4294966272 }
  0x3c   : > { %1716 = dma.done.wait (%p122_p1), [#allocation7], 256  }
  0x3d   : > { %1718 = vsyncadd (%p122_p1), [#allocation7], 4294967040  ;;  %v1752_v0 = vmov 0   ;;  %v1320_v1 = vld [vmem:[%s1938_s28 + $0x30] sm:$0xf]  ;;  %v602_v18 = vld [vmem:[%s2078_s5] sm:$0xff] }
  0x3e   : > { %1531 = vset.pattern.permute.xlu1 %v1752_v0  ;;  %1530 = vset.pattern.permute.xlu0 %v1752_v0  ;;  %v1430_v2 = vld [vmem:[%s1938_s28 + $0x34] sm:$0xf0]  ;;  %v1429_v3 = vld [vmem:[%s1938_s28 + $0x34] sm:$0xf]  ;;  %v1322_v5 = vld [vmem:[%s1938_s28 + $0x38] sm:$0xf0] }
  0x3f   : > { %1532 = vset.pattern.permute.xlu2 %v1752_v0  ;;  %v1321_v4 = vor.u32 %v1430_v2, %v1320_v1  ;;  %v1312_v6 = vld [vmem:[%s1938_s28 + $0x20] sm:$0xf]  ;;  %v1428_v7 = vld [vmem:[%s1938_s28 + $0x24] sm:$0xf0]  ;;  %v1325_v8 = vor.u32 %v1429_v3, %v1322_v5  ;;  %v1427_v9 = vld [vmem:[%s1938_s28 + $0x24] sm:$0xf]  ;;  %608 = vperm.xlu1 %1531, %v602_v18  }
  0x40   : > { %v1314_v10 = vld [vmem:[%s1938_s28 + $0x28] sm:$0xf0]  ;;  %v1313_v11 = vor.u32 %v1428_v7, %v1312_v6  ;;  %v1304_v13 = vld [vmem:[%s1938_s28 + $0x10] sm:$0xf]  ;;  %v1426_v14 = vld [vmem:[%s1938_s28 + $0x14] sm:$0xf0] }
  0x41   : > { %687 = vmatpush.bf16.msra.mxu0 %v1321_v4  ;;  %706 = vmatpush.bf16.msra.mxu1 %v1325_v8  ;;  %v1317_v12 = vor.u32 %v1427_v9, %v1314_v10  ;;  %v1425_v15 = vld [vmem:[%s1938_s28 + $0x14] sm:$0xf]  ;;  %v1306_v16 = vld [vmem:[%s1938_s28 + $0x18] sm:$0xf0]  ;;  %v1305_v19 = vor.u32 %v1426_v14, %v1304_v13  ;;  %v1296_v21 = vld [vmem:[%s1938_s28] sm:$0xf] }
  0x42   : > { %v604_v17 = vld [vmem:[%s2078_s5 + $0x10] sm:$0xff]  ;;  %v1309_v20 = vor.u32 %v1425_v15, %v1306_v16  ;;  %v1424_v22 = vld [vmem:[%s1938_s28 + $0x4] sm:$0xf0]  ;;  %v1423_v23 = vld [vmem:[%s1938_s28 + $0x4] sm:$0xf]  ;;  %vm676_vm0 = vcmask 523264  }
  0x43   : > { %618 = vperm.xlu0 %1530, %v604_v17   ;;  %v1298_v24 = vld [vmem:[%s1938_s28 + $0x8] sm:$0xf0]  ;;  %v1297_v25 = vor.u32 %v1424_v22, %v1296_v21  ;;  %v605_v26 = vld [vmem:[%s2078_s5 + $0x18] sm:$0xff]  ;;  %v1421_v29 = vld [vmem:[#allocation8] sm:$0xff]  ;;  %p567_p1 = scmp.lt.s32.totalorder %s1737_s24, 1  ;;  %s2113_s30 = sld [smem:[#allocation20_spill]] }
  0x44   : > { %v1301_v27 = vor.u32 %v1423_v23, %v1298_v24  ;;  %v603_v28 = vld [vmem:[%s2078_s5 + $0x8] sm:$0xff]  ;;  %v944_v30 = vld [vmem:[%s2082_s9] sm:$0xff]  ;;  %v795_v43 = vld [vmem:[%s1930_s13 + $0x10] sm:$0xff]  ;;  %s2114_s14 = sld [smem:[#allocation23_spill]]  ;;  %vm970_vm13 = vcmask 261120   ;;  %s1281_s2 = sshll.u32 %s1926_s0, 3 }
  0x45   : > { %688 = vmatpush.bf16.msra.mxu0 %v1313_v11  ;;  %707 = vmatpush.bf16.msra.mxu1 %v1317_v12  ;;  %v1023_v31 = vld [vmem:[%s2084_s11] sm:$0xf]  ;;  %v1422_v32 = vld [vmem:[#allocation8 + $0x8] sm:$0xff]  ;;  %v796_v44 = vld [vmem:[%s1930_s13 + $0x18] sm:$0xff]  ;;  %799 = vst [vmem:[#allocation2 + $0x30] sm:$0xff] %v795_v43  ;;  %s1446_s23 = sshll.u32 %s1737_s24, 3 }
  0x46   : > { %800 = vst [vmem:[#allocation2 + $0x38] sm:$0xff] %v796_v44  ;;  %v793_v50 = vld [vmem:[%s1930_s13] sm:$0xff]  ;;  %v794_v51 = vld [vmem:[%s1930_s13 + $0x8] sm:$0xff]  ;;  %s2010_s13 = scalar_select %p567_p1, %s1737_s24, 1 }
  0x47   : > { %613 = vperm.xlu1 %1531, %v603_v28   ;;  %797 = vst [vmem:[#allocation2 + $0x20] sm:$0xff] %v793_v50  ;;  %s2116_s27 = sld [smem:[#allocation25_spill]]  ;;  %s565_s20 = scalar_lea.vmem [#allocation9], %s1281_s2 }
  0x48   : > { %798 = vst [vmem:[#allocation2 + $0x28] sm:$0xff] %v794_v51  ;;  %s1420_s16 = sshll.u32 %s2010_s13, 4  ;;  %s1419_s15 = sshll.u32 %s2010_s13, 3 }
  0x49   : > { %689 = vmatpush.bf16.msra.mxu0 %v1305_v19  ;;  %708 = vmatpush.bf16.msra.mxu1 %v1309_v20  ;;  %s584_s29 = scalar_lea.vmem %s2074_s1, %s1420_s16  ;;  %s574_s10 = scalar_lea.vmem %s2113_s30, %s1419_s15 }
  0x4a   : > { %s2115_s13 = sld [smem:[#allocation24_spill]]  ;;  %s1108_s15 = sshll.u32 %s565_s20, 4  ;;  %s1109_s15 = int_to_ptr.vmem [resolvable:$true] %s1108_s15 }
  0x4b   : > { %623 = vperm.xlu0 %1530, %v605_v26   ;;  %s1093_s24 = scalar_lea.sflag [#allocation5], %s1926_s0 }
  0x4c   : > { %v1368_v60 = vld [vmem:[#allocation2 + $0x30] sm:$0xf]  ;;  %v1438_v61 = vld [vmem:[#allocation2 + $0x34] sm:$0xf] }
  0x4d   : > { %690 = vmatpush.bf16.msra.mxu0 %v1297_v25  ;;  %709 = vmatpush.bf16.msra.mxu1 %v1301_v27  ;;  %v1439_v0 = vld [vmem:[#allocation2 + $0x34] sm:$0xf0]  ;;  %v1370_v1 = vld [vmem:[#allocation2 + $0x38] sm:$0xf0]  ;;  %s1675_s19 = scalar_lea.hbm %s2116_s27, 16 }
  0x4e   : > { %v1369_v5 = vor.u32 %v1439_v0, %v1368_v60  ;;  %v1373_v6 = vor.u32 %v1438_v61, %v1370_v1  ;;  %v1360_v12 = vld [vmem:[#allocation2 + $0x20] sm:$0xf]  ;;  %v1436_v19 = vld [vmem:[#allocation2 + $0x24] sm:$0xf] }
  0x4f   : > { %1026 = vperm.xlu1 %1531, %v1023_v31   ;;  %v1437_v15 = vld [vmem:[#allocation2 + $0x24] sm:$0xf0]  ;;  %v1362_v20 = vld [vmem:[#allocation2 + $0x28] sm:$0xf0] }
  0x50   : > { %1326 = vmatmul.msk.bf16.vlgmr.msra.gmra.mxu0 %vm676_vm0, %v1421_v29  ;;  %1328 = vmatmul.msk.bf16.vlgmr.msra.gmra.mxu1 %vm676_vm0, %v1421_v29  ;;  %v1361_v18 = vor.u32 %v1437_v15, %v1360_v12  ;;  %v1365_v25 = vor.u32 %v1436_v19, %v1362_v20 }
  0x51   : > { %875 = vmatpush.bf16.msra.mxu2 %v1369_v5  ;;  %889 = vmatpush.bf16.msra.mxu3 %v1373_v6  ;;  %v936_v6 = vld [vmem:[%s584_s29 + $0x8] sm:$0xff] }
  0x53   : > { %947 = vperm.xlu0 %1530, %v944_v30  }
  0x55   : > { %876 = vmatpush.bf16.msra.mxu2 %v1361_v18  ;;  %890 = vmatpush.bf16.msra.mxu3 %v1365_v25 }
  0x60   : > { %1327 = vmatmul.msk.bf16.gmra.mxu0 %vm676_vm0, %v1422_v32  ;;  %1329 = vmatmul.msk.bf16.gmra.mxu1 %vm676_vm0, %v1422_v32 }
  0xb1   : > { %v609_v33 = vpop.permute.xlu1 %608 }
  0xb5   : > { %v619_v56 = vpop.permute.xlu0 %618 }
  0xb9   : > { %v614_v42 = vpop.permute.xlu1 %613 }
  0xbd   : > { %v624_v27 = vpop.permute.xlu0 %623 }
  0xcd   : > { %v692_v34 = vpop.f32.mrf.mxu0  ;;  %v711_v36 = vpop.f32.mrf.mxu1 }
  0xce   : > { %v693_v35 = vadd.f32 %v692_v34, %v609_v33  ;;  %v712_v37 = vadd.f32 %v711_v36, %v609_v33 }
  0xd0   : > { %v729_v38 = vmin.f32 %v693_v35, 0.0  ;;  %v730_v39 = vmin.f32 %v712_v37, 0.0  ;;  %vm721_vm1 = vcmp.gt.f32.partialorder %v693_v35, 0.0  ;;  %vm722_vm2 = vcmp.gt.f32.partialorder %v712_v37, 0.0 }
  0xd2   : > { %v737_v40 = vmul.f32 1.442695, %v729_v38  ;;  %v739_v41 = vmul.f32 1.442695, %v730_v39 }
  0xd4   : > { %1533 = vpow2.f32 %v737_v40 }
  0xd5   : > { %1535 = vpow2.f32 %v739_v41  ;;  %v694_v45 = vpop.f32.mrf.mxu0  ;;  %v713_v47 = vpop.f32.mrf.mxu1 }
  0xd6   : > { %v1988_v46 = vadd.f32 %v694_v45, %v614_v42  ;;  %v1990_v48 = vadd.f32 %v713_v47, %v614_v42 }
  0xd8   : > { %v731_v49 = vmin.f32 %v1988_v46, 0.0  ;;  %v732_v52 = vmin.f32 %v1990_v48, 0.0  ;;  %vm723_vm3 = vcmp.gt.f32.partialorder %v1988_v46, 0.0  ;;  %vm724_vm4 = vcmp.gt.f32.partialorder %v1990_v48, 0.0 }
  0xda   : > { %v1534_v53 = vpop.eup %1533  ;;  %v741_v54 = vmul.f32 1.442695, %v731_v49  ;;  %v743_v58 = vmul.f32 1.442695, %v732_v52 }
  0xdb   : > { %v1536_v55 = vpop.eup %1535  ;;  %v1330_v57 = vadd.f32 -1.0, %v1534_v53 }
  0xdc   : > { %v1331_v59 = vadd.f32 -1.0, %v1536_v55  ;;  %1537 = vpow2.f32 %v741_v54 }
  0xdd   : > { %v761_v62 = vmul.f32 1.6732632, %v1330_v57  ;;  %1539 = vpow2.f32 %v743_v58  ;;  %v697_v63 = vpop.f32.mrf.mxu0  ;;  %v716_v4 = vpop.f32.mrf.mxu1 }
  0xde   : > { %v762_v2 = vmul.f32 1.6732632, %v1331_v59  ;;  %v1996_v3 = vadd.f32 %v697_v63, %v619_v56  ;;  %v717_v8 = vadd.f32 %v716_v4, %v619_v56  ;;  %v812_v59 = vld [vmem:[%s2080_s7 + $0x8] sm:$0xff] }
  0xdf   : > { %v769_v7 = vsel %vm721_vm1, %v693_v35, %v761_v62 }
  0xe0   : > { %v777_v9 = vmul.f32 1.050701, %v769_v7  ;;  %v770_v10 = vsel %vm722_vm2, %v712_v37, %v762_v2  ;;  %v733_v11 = vmin.f32 %v1996_v3, 0.0  ;;  %v734_v14 = vmin.f32 %v717_v8, 0.0 }
  0xe1   : > { %v778_v13 = vmul.f32 1.050701, %v770_v10  ;;  %vm725_vm5 = vcmp.gt.f32.partialorder %v1996_v3, 0.0  ;;  %vm726_vm6 = vcmp.gt.f32.partialorder %v717_v8, 0.0 }
  0xe2   : > { %v1538_v16 = vpop.eup %1537  ;;  %v745_v17 = vmul.f32 1.442695, %v733_v11  ;;  %v747_v24 = vmul.f32 1.442695, %v734_v14 }
  0xe3   : > { %v1540_v21 = vpop.eup %1539  ;;  %v785_v22 = vpack.c.bf16 %v778_v13, %v777_v9  ;;  %v1332_v23 = vadd.f32 -1.0, %v1538_v16 }
  0xe4   : > { %v1333_v26 = vadd.f32 -1.0, %v1540_v21  ;;  %1541 = vpow2.f32 %v745_v17  ;;  %v1431_v17 = vld [vmem:[%s2079_s6] sm:$0xff] }
  0xe5   : > { %789 = vst [vmem:[#allocation2] sm:$0xff] %v785_v22  ;;  %v763_v28 = vmul.f32 1.6732632, %v1332_v23  ;;  %1543 = vpow2.f32 %v747_v24  ;;  %v699_v29 = vpop.f32.mrf.mxu0  ;;  %v718_v32 = vpop.f32.mrf.mxu1 }
  0xe6   : > { %v764_v30 = vmul.f32 1.6732632, %v1333_v26  ;;  %v700_v31 = vadd.f32 %v699_v29, %v624_v27  ;;  %v719_v34 = vadd.f32 %v718_v32, %v624_v27 }
  0xe7   : > { %v771_v33 = vsel %vm723_vm3, %v1988_v46, %v763_v28  ;;  %vm1088_vm3 = vcmask 1043456  }
  0xe8   : > { %v779_v35 = vmul.f32 1.050701, %v771_v33  ;;  %v772_v36 = vsel %vm724_vm4, %v1990_v48, %v764_v30  ;;  %v735_v37 = vmin.f32 %v700_v31, 0.0  ;;  %v736_v39 = vmin.f32 %v719_v34, 0.0  ;;  %v811_v48 = vld [vmem:[%s2080_s7] sm:$0xff] }
  0xe9   : > { %v780_v38 = vmul.f32 1.050701, %v772_v36  ;;  %815 = vperm.xlu2 %1532, %v811_v48   ;;  %vm727_vm7 = vcmp.gt.f32.partialorder %v700_v31, 0.0  ;;  %vm728_vm8 = vcmp.gt.f32.partialorder %v719_v34, 0.0 }
  0xea   : > { %v1542_v40 = vpop.eup %1541  ;;  %v749_v41 = vmul.f32 1.442695, %v735_v37  ;;  %v751_v45 = vmul.f32 1.442695, %v736_v39 }
  0xeb   : > { %v1544_v42 = vpop.eup %1543  ;;  %v786_v43 = vpack.c.bf16 %v780_v38, %v779_v35  ;;  %v1334_v44 = vadd.f32 -1.0, %v1542_v40 }
  0xec   : > { %v1335_v47 = vadd.f32 -1.0, %v1544_v42  ;;  %1545 = vpow2.f32 %v749_v41  ;;  %v1344_v13 = vld [vmem:[#allocation2] sm:$0xf]  ;;  %v1432_v14 = vld [vmem:[#allocation2 + $0x4] sm:$0xf] }
  0xed   : > { %790 = vst [vmem:[#allocation2 + $0x8] sm:$0xff] %v786_v43  ;;  %v765_v46 = vmul.f32 1.6732632, %v1334_v44  ;;  %1547 = vpow2.f32 %v751_v45 }
  0xee   : > { %v766_v49 = vmul.f32 1.6732632, %v1335_v47 }
  0xef   : > { %v773_v50 = vsel %vm725_vm5, %v1996_v3, %v765_v46  ;;  %v935_v3 = vld [vmem:[%s584_s29] sm:$0xff]  ;;  %s1106_s29 = scalar_lea.hbm %s2116_s27, %s1446_s23 }
  0xf0   : > { %v781_v51 = vmul.f32 1.050701, %v773_v50  ;;  %v774_v52 = vsel %vm726_vm6, %v717_v8, %v766_v49  ;;  %s1110_s21 = sshll.u32 %s1106_s29, 4  ;;  %s1111_s21 = int_to_ptr.hbm [resolvable:$true] %s1110_s21 }
  0xf1   : > { %v782_v53 = vmul.f32 1.050701, %v774_v52  ;;  %820 = vperm.xlu2 %1532, %v812_v59   ;;  %s1669_s4 = sshra.s32 %s1111_s21, 4  ;;  %s1670_s4 = int_to_ptr.hbm [resolvable:$true] %s1669_s4 }
  0xf2   : > { %v1546_v54 = vpop.eup %1545  ;;  %s1671_s30 = scalar_lea.hbm %s1670_s4, 8  ;;  %p1676_p12 = scmp.lt.s32.totalorder %s1670_s4, %s2116_s27 }
  0xf3   : > { %v1548_v55 = vpop.eup %1547  ;;  %v787_v56 = vpack.c.bf16 %v782_v53, %v781_v51  ;;  %v1336_v57 = vadd.f32 -1.0, %v1546_v54  ;;  %p1672_p4 = scmp.ne.s32.totalorder %s1670_s4, %s1671_s30  ;;  %p1677_p13 = scmp.lt.s32.totalorder %s1675_s19, %s1671_s30 }
  0xf4   : > { %v1337_v58 = vadd.f32 -1.0, %v1548_v55  ;;  %v1433_v11 = vld [vmem:[#allocation2 + $0x4] sm:$0xf0]  ;;  %v1346_v12 = vld [vmem:[#allocation2 + $0x8] sm:$0xf0] }
  0xf5   : > { %791 = vst [vmem:[#allocation2 + $0x10] sm:$0xff] %v787_v56  ;;  %v767_v60 = vmul.f32 1.6732632, %v1336_v57  ;;  %v1345_v15 = vor.u32 %v1433_v11, %v1344_v13  ;;  %v1349_v16 = vor.u32 %v1432_v14, %v1346_v12  ;;  %p1673_p8 = pnand %p1672_p4, %p1893_p5  ;;  %p1678_p0 = por %p1677_p13, %p1676_p12 }
  0xf6   : > { %v768_v61 = vmul.f32 1.6732632, %v1337_v58 }
  0xf7   : > { %v775_v62 = vsel %vm727_vm7, %v700_v31, %v767_v60  ;;  %p1674_p10 = pneg %p1673_p8 }
  0xf8   : > { %v783_v63 = vmul.f32 1.050701, %v775_v62  ;;  %v776_v0 = vsel %vm728_vm8, %v719_v34, %v768_v61 }
  0xf9   : > { %v784_v1 = vmul.f32 1.050701, %v776_v0  ;;  %v1018_v0 = vld [vmem:[%s574_s10] sm:$0xff]  ;;  %p1679_p3 = pnand %p1678_p0, %p1674_p10 }
  0xfb   : > { %v788_v2 = vpack.c.bf16 %v784_v1, %v783_v63 }
  0xfc   : > { %v1352_v4 = vld [vmem:[#allocation2 + $0x10] sm:$0xf]  ;;  %v1434_v5 = vld [vmem:[#allocation2 + $0x14] sm:$0xf] }
  0xfd   : > { %792 = vst [vmem:[#allocation2 + $0x18] sm:$0xff] %v788_v2 }
  0xfe   : > { %937 = vst [vmem:[#allocation2 + $0x10] sm:$0xff] %v935_v3 }
 0x104   : > { %v1435_v7 = vld [vmem:[#allocation2 + $0x14] sm:$0xf0]  ;;  %v1354_v8 = vld [vmem:[#allocation2 + $0x18] sm:$0xf0] }
 0x105   : > { %v1353_v9 = vor.u32 %v1435_v7, %v1352_v4  ;;  %v1357_v10 = vor.u32 %v1434_v5, %v1354_v8  ;;  %938 = vst [vmem:[#allocation2 + $0x18] sm:$0xff] %v936_v6  ;;  %v1390_v21 = vld [vmem:[#allocation2 + $0x10] sm:$0xf]  ;;  %v1442_v23 = vld [vmem:[#allocation2 + $0x14] sm:$0xf]  ;;  %v948_v8 = vpop.permute.xlu0 %947 }
 0x106   : > { %v939_v7 = vld [vmem:[%s2114_s14] sm:$0xf] }
 0x107   : > { %877 = vmatpush.bf16.msra.mxu2 %v1353_v9  ;;  %891 = vmatpush.bf16.msra.mxu3 %v1357_v10 }
 0x10b   : > { %878 = vmatpush.bf16.msra.mxu2 %v1345_v15  ;;  %892 = vmatpush.bf16.msra.mxu3 %v1349_v16 }
 0x10c   : > { %v1443_v22 = vld [vmem:[#allocation2 + $0x14] sm:$0xf0]  ;;  %v1392_v27 = vld [vmem:[#allocation2 + $0x18] sm:$0xf0] }
 0x10d   : > { %v1391_v26 = vor.u32 %v1443_v22, %v1390_v21  ;;  %v1395_v28 = vor.u32 %v1442_v23, %v1392_v27 }
 0x10e   : > { %1374 = vmatmul.msk.bf16.vlgmr.msra.gmra.mxu2 %vm676_vm0, %v1431_v17  ;;  %1375 = vmatmul.msk.bf16.vlgmr.msra.gmra.mxu3 %vm676_vm0, %v1431_v17  ;;  %vm1039_vm0 = vcmask 130048  }
 0x10f   : > { %980 = vmatpush.bf16.msrb.mxu2 %v1391_v26  ;;  %993 = vmatpush.bf16.msrb.mxu3 %v1395_v28 }
 0x143   : > { %v816_v18 = vpop.permute.xlu2 %815 }
 0x14b   : > { %v821_v33 = vpop.permute.xlu2 %820 }
 0x191   : > { %v880_v19 = vpop.f32.mrf.mxu2  ;;  %v894_v20 = vpop.f32.mrf.mxu3 }
 0x192   : > { %v881_v24 = vadd.f32 %v880_v19, %v816_v18  ;;  %v895_v25 = vadd.f32 %v894_v20, %v816_v18 }
 0x194   : > { %v903_v29 = vmin.f32 %v881_v24, 0.0  ;;  %v904_v30 = vmin.f32 %v895_v25, 0.0  ;;  %vm899_vm9 = vcmp.gt.f32.partialorder %v881_v24, 0.0  ;;  %vm900_vm10 = vcmp.gt.f32.partialorder %v895_v25, 0.0 }
 0x196   : > { %v907_v31 = vmul.f32 1.442695, %v903_v29  ;;  %v909_v32 = vmul.f32 1.442695, %v904_v30 }
 0x198   : > { %1549 = vpow2.f32 %v907_v31 }
 0x199   : > { %1551 = vpow2.f32 %v909_v32  ;;  %v882_v34 = vpop.f32.mrf.mxu2  ;;  %v896_v35 = vpop.f32.mrf.mxu3 }
 0x19a   : > { %v883_v36 = vadd.f32 %v882_v34, %v821_v33  ;;  %v897_v37 = vadd.f32 %v896_v35, %v821_v33 }
 0x19c   : > { %v905_v38 = vmin.f32 %v883_v36, 0.0  ;;  %v906_v39 = vmin.f32 %v897_v37, 0.0  ;;  %vm901_vm11 = vcmp.gt.f32.partialorder %v883_v36, 0.0  ;;  %vm902_vm12 = vcmp.gt.f32.partialorder %v897_v37, 0.0 }
 0x19e   : > { %v1550_v40 = vpop.eup %1549  ;;  %v911_v41 = vmul.f32 1.442695, %v905_v38  ;;  %v913_v42 = vmul.f32 1.442695, %v906_v39 }
 0x19f   : > { %v1552_v43 = vpop.eup %1551  ;;  %v1376_v44 = vadd.f32 -1.0, %v1550_v40 }
 0x1a0   : > { %v1377_v45 = vadd.f32 -1.0, %v1552_v43  ;;  %1553 = vpow2.f32 %v911_v41 }
 0x1a1   : > { %v919_v47 = vmul.f32 1.6732632, %v1376_v44  ;;  %1555 = vpow2.f32 %v913_v42 }
 0x1a2   : > { %v920_v46 = vmul.f32 1.6732632, %v1377_v45 }
 0x1a3   : > { %v923_v49 = vsel %vm899_vm9, %v881_v24, %v919_v47 }
 0x1a4   : > { %v927_v48 = vmul.f32 1.050701, %v923_v49  ;;  %v924_v50 = vsel %vm900_vm10, %v895_v25, %v920_v46 }
 0x1a5   : > { %v928_v51 = vmul.f32 1.050701, %v924_v50 }
 0x1a6   : > { %v1554_v52 = vpop.eup %1553 }
 0x1a7   : > { %v1556_v53 = vpop.eup %1555  ;;  %v931_v54 = vpack.c.bf16 %v928_v51, %v927_v48  ;;  %v1378_v55 = vadd.f32 -1.0, %v1554_v52 }
 0x1a8   : > { %v1379_v56 = vadd.f32 -1.0, %v1556_v53 }
 0x1a9   : > { %933 = vst [vmem:[#allocation2] sm:$0xff] %v931_v54  ;;  %v921_v57 = vmul.f32 1.6732632, %v1378_v55 }
 0x1aa   : > { %v922_v58 = vmul.f32 1.6732632, %v1379_v56 }
 0x1ab   : > { %v925_v59 = vsel %vm901_vm11, %v883_v36, %v921_v57  ;;  %v1020_v36 = vld [vmem:[%s2115_s13] sm:$0x3] }
 0x1ac   : > { %v929_v60 = vmul.f32 1.050701, %v925_v59  ;;  %v926_v61 = vsel %vm902_vm12, %v897_v37, %v922_v58  ;;  %v1027_v37 = vpop.permute.xlu1 %1026 }
 0x1ad   : > { %v930_v62 = vmul.f32 1.050701, %v926_v61 }
 0x1af   : > { %v932_v63 = vpack.c.bf16 %v930_v62, %v929_v60 }
 0x1b0   : > { %v1382_v1 = vld [vmem:[#allocation2] sm:$0xf]  ;;  %v1440_v3 = vld [vmem:[#allocation2 + $0x4] sm:$0xf] }
 0x1b1   : > { %934 = vst [vmem:[#allocation2 + $0x8] sm:$0xff] %v932_v63 }
 0x1b8   : > { %v1441_v2 = vld [vmem:[#allocation2 + $0x4] sm:$0xf0]  ;;  %v1384_v4 = vld [vmem:[#allocation2 + $0x8] sm:$0xf0] }
 0x1b9   : > { %v1383_v5 = vor.u32 %v1441_v2, %v1382_v1  ;;  %v1387_v6 = vor.u32 %v1440_v3, %v1384_v4  ;;  %1019 = vst [vmem:[#allocation2 + $0x8] sm:$0xff] %v1018_v0 }
 0x1bb   : > { %981 = vmatpush.bf16.msrb.mxu2 %v1383_v5  ;;  %994 = vmatpush.bf16.msrb.mxu3 %v1387_v6 }
 0x1be   : > { %1396 = vmatmul.msk.bf16.vlgmr.msrb.gmra.mxu2 %vm970_vm13, %v939_v7  ;;  %1397 = vmatmul.msk.bf16.vlgmr.msrb.gmra.mxu3 %vm970_vm13, %v939_v7 }
 0x1c0   : > { %v1445_v30 = vld [vmem:[#allocation2 + $0x4] sm:$0xf0]  ;;  %v1404_v31 = vld [vmem:[#allocation2 + $0x8] sm:$0xf0] }
 0x241   : > { %v983_v9 = vpop.f32.mrf.mxu2  ;;  %v996_v10 = vpop.f32.mrf.mxu3 }
 0x242   : > { %v984_v11 = vadd.f32 %v983_v9, %v948_v8  ;;  %v997_v12 = vadd.f32 %v996_v10, %v948_v8 }
 0x244   : > { %v1002_v13 = vmin.f32 %v984_v11, 0.0  ;;  %v1003_v14 = vmin.f32 %v997_v12, 0.0  ;;  %vm1000_vm14 = vcmp.gt.f32.partialorder %v984_v11, 0.0  ;;  %vm1001_vm15 = vcmp.gt.f32.partialorder %v997_v12, 0.0 }
 0x246   : > { %v1004_v15 = vmul.f32 1.442695, %v1002_v13  ;;  %v1006_v16 = vmul.f32 1.442695, %v1003_v14 }
 0x248   : > { %1557 = vpow2.f32 %v1004_v15 }
 0x249   : > { %1559 = vpow2.f32 %v1006_v16  ;;  %v985_v17 = vpop.f32.mrf.mxu2  ;;  %v998_v18 = vpop.f32.mrf.mxu3 }
 0x24e   : > { %v1558_v19 = vpop.eup %1557 }
 0x24f   : > { %v1560_v20 = vpop.eup %1559  ;;  %v1398_v21 = vadd.f32 -1.0, %v1558_v19 }
 0x250   : > { %v1399_v22 = vadd.f32 -1.0, %v1560_v20 }
 0x251   : > { %v1010_v23 = vmul.f32 1.6732632, %v1398_v21 }
 0x252   : > { %v1011_v24 = vmul.f32 1.6732632, %v1399_v22 }
 0x253   : > { %v1012_v25 = vsel %vm1000_vm14, %v984_v11, %v1010_v23 }
 0x254   : > { %v1014_v26 = vmul.f32 1.050701, %v1012_v25  ;;  %v1013_v27 = vsel %vm1001_vm15, %v997_v12, %v1011_v24 }
 0x255   : > { %v1015_v28 = vmul.f32 1.050701, %v1013_v27 }
 0x257   : > { %v1016_v29 = vpack.c.bf16 %v1015_v28, %v1014_v26 }
 0x259   : > { %1017 = vst [vmem:[#allocation2] sm:$0xff] %v1016_v29 }
 0x260   : > { %v1402_v32 = vld [vmem:[#allocation2] sm:$0xf]  ;;  %v1444_v33 = vld [vmem:[#allocation2 + $0x4] sm:$0xf] }
 0x261   : > { %v1403_v34 = vor.u32 %v1445_v30, %v1402_v32  ;;  %v1407_v35 = vor.u32 %v1444_v33, %v1404_v31 }
 0x263   : > { %1050 = vmatpush.bf16.msrb.mxu0 %v1403_v34  ;;  %1063 = vmatpush.bf16.msrb.mxu1 %v1407_v35 }
 0x266   : > { %1408 = vmatmul.msk.bf16.vlgmr.msrb.gmra.mxu0 %vm1039_vm0, %v1020_v36  ;;  %1409 = vmatmul.msk.bf16.vlgmr.msrb.gmra.mxu1 %vm1039_vm0, %v1020_v36 }
 0x2e3   : > { %v1052_v38 = vpop.f32.mrf.mxu0  ;;  %v1065_v39 = vpop.f32.mrf.mxu1 }
 0x2e4   : > { %v1053_v40 = vadd.f32 %v1052_v38, %v1027_v37  ;;  %v1066_v41 = vadd.f32 %v1065_v39, %v1027_v37 }
 0x2e6   : > { %v1071_v42 = vmin.f32 %v1053_v40, 0.0  ;;  %v1072_v43 = vmin.f32 %v1066_v41, 0.0  ;;  %vm1069_vm1 = vcmp.gt.f32.partialorder %v1053_v40, 0.0  ;;  %vm1070_vm2 = vcmp.gt.f32.partialorder %v1066_v41, 0.0 }
 0x2e8   : > { %v1073_v44 = vmul.f32 1.442695, %v1071_v42  ;;  %v1075_v45 = vmul.f32 1.442695, %v1072_v43 }
 0x2ea   : > { %1561 = vpow2.f32 %v1073_v44 }
 0x2eb   : > { %1563 = vpow2.f32 %v1075_v45  ;;  %v1067_v47 = vpop.f32.mrf.mxu1  ;;  %v1054_v46 = vpop.f32.mrf.mxu0 }
 0x2f0   : > { %v1562_v49 = vpop.eup %1561 }
 0x2f1   : > { %v1564_v48 = vpop.eup %1563  ;;  %v1410_v50 = vadd.f32 -1.0, %v1562_v49 }
 0x2f2   : > { %v1411_v51 = vadd.f32 -1.0, %v1564_v48 }
 0x2f3   : > { %v1079_v52 = vmul.f32 1.6732632, %v1410_v50 }
 0x2f4   : > { %v1080_v53 = vmul.f32 1.6732632, %v1411_v51 }
 0x2f5   : > { %v1081_v54 = vsel %vm1069_vm1, %v1053_v40, %v1079_v52 }
 0x2f6   : > { %v1082_v55 = vsel %vm1070_vm2, %v1066_v41, %v1080_v53  ;;  %v1083_v57 = vmul.f32 1.050701, %v1081_v54 }
 0x2f7   : > { %v1084_v56 = vmul.f32 1.050701, %v1082_v55 }
 0x2f9   : > { %v1087_v58 = vrot.slane %v1084_v56, 4 }
 0x2fb   : > { %v1089_v59 = vsel %vm1088_vm3, %v1083_v57, %v1087_v58 }
 0x2fc   : > { %1091 = vst [vmem:[%s565_s20] sm:$0xff] %v1089_v59 }
 0x2fd   : > { %1682 = shalt.err (!%p1679_p3)
}
 0x2fe   : > { %1455 = dma.vmem_to_hbm [thread:$0]  (%p1893_p5), %s1109_s15, 128, %s1111_s21, %s1093_s24  }
 0x2ff PF: > { %s2118_s0 = sld [smem:[#allocation14_spill]]  ;;  %p1469_p7 = pnand %p1270_p11, %p1863_p6 }
 0x301   : > { %p1470_p9 = pneg %p1469_p7 }
 0x305   : > { %s1122_s13 = sand.u32 1, %s2118_s0  }
 0x306   : > { %s1123_s2 = scalar_lea.sflag [#allocation5], %s1122_s13 }
 0x307   : > { %1720 = dma.done.wait (%p1470_p9), %s1123_s2, 128  }
 0x308   : > { %1722 = vsyncadd (%p1470_p9), %s1123_s2, 4294967168  ;;  %s31_s26 = sadd.s32 1, %s1745_s26   ;;  %s2120_s23 = sld [smem:[#allocation15_spill]] }
 0x309   : > { %p28_p2 = scmp.ge.s32.totalorder %s31_s26, 4   ;;  %s2121_s16 = sld [smem:[#allocation19_spill]] }
 0x30a   : > { %s2122_s28 = sld [smem:[#allocation17_spill]]  ;;  %s2123_s21 = smov %s1729_s22 }
 0x30b   : > { %s2126_s24 = smov %s1741_s25 }
 0x30c   :  { %30 = sbr.rel (!%p28_p2) target bundleno = 15 (0xf), region = 136 }
 0x30e   : > { %s2124_s22 = smov %s2120_s23 }
 0x30f   : > { %s2125_s23 = smov %s2121_s16 }
 0x310   : > { %s2127_s25 = smov %s2122_s28 }
 0x311   :  { %1129 = vsyncpa [#allocation4], 1 }
 0x312   :  { %1131 = vsyncpa [#allocation4 + $0x1], 1 }
 0x313   :  { %1132 = vsyncpa [#allocation7], 1 }
 0x314   :  { %1134 = vsyncpa [#allocation7 + $0x1], 1 }
 0x315   :  { %1135 = vsyncpa [#allocation5], 1 }
 0x316   :  { %1137 = vsyncpa [#allocation5 + $0x1], 1 }

</bundles_post_ra>
